<compile_context>
chip_gen: v6e
topology: v6e:2x2x1
jax: 0.10.0
libtpu: 0.0.40
codegen_flags: <defaults>
</compile_context>

<pallas_src>
import functools
import math

import jax
import jax.numpy as jnp
from jax import lax
from jax.experimental import pallas as pl
from jax.experimental.pallas import tpu as pltpu


def _sdpa_kernel(q_ref, k_ref, v_ref, mask_ref, ctx_ref, attn_ref, *, scale):
    # q_ref: (TB, TQ, dk)   k_ref: (TB, Lk, dk)   v_ref: (TB, Lk, dv)
    # mask_ref: (TB, TQ, Lk) int8 (nonzero => masked out)
    # Fold 1/sqrt(dk) into Q (Lq x dk multiply instead of Lq x Lk).
    q = q_ref[...] * jnp.asarray(scale, dtype=q_ref.dtype)
    k = k_ref[...]
    v = v_ref[...]
    m = mask_ref[...]

    # scores[b, q, k] = sum_d q[b,q,d] * k[b,k,d]
    # No explicit K transpose; native-dtype operands on the MXU, fp32 accumulation.
    scores = lax.dot_general(
        q, k,
        dimension_numbers=(((2,), (2,)), ((0,), (0,))),
        preferred_element_type=jnp.float32,
    )
    # masked_fill_(attn_mask, -1e9)
    scores = jnp.where(m != 0, jnp.float32(-1e9), scores)

    # Numerically-stable softmax over the key axis (matches torch semantics).
    s_max = jnp.max(scores, axis=-1, keepdims=True)
    e = jnp.exp(scores - s_max)
    attn = e * pl.reciprocal(jnp.sum(e, axis=-1, keepdims=True), approx=False)

    # context = attn @ V, feeding the MXU in V's dtype, accumulating in fp32.
    ctx = lax.dot_general(
        attn.astype(v_ref.dtype), v,
        dimension_numbers=(((2,), (1,)), ((0,), (0,))),
        preferred_element_type=jnp.float32,
    )

    ctx_ref[...] = ctx.astype(ctx_ref.dtype)
    attn_ref[...] = attn.astype(attn_ref.dtype)


def _divisors_desc(n):
    return [d for d in range(n, 0, -1) if n % d == 0]


def _pick_tiles(BH, Lq, Lk, dk, dv, in_itemsize, attn_itemsize,
                vmem_budget_bytes=20 * 1024 * 1024):
    """Pick (TB heads-per-step, TQ query-rows-per-step) so one grid step's
    double-buffered blocks + fp32 scores stay within a v7x-safe VMEM budget."""

    def step_bytes(TB, TQ):
        qb = TB * TQ * dk * in_itemsize
        kb = TB * Lk * dk * in_itemsize
        vb = TB * Lk * dv * in_itemsize
        mb = TB * TQ * Lk * 1                  # int8 mask
        cb = TB * TQ * dv * in_itemsize        # ctx output
        ab = TB * TQ * Lk * attn_itemsize      # attn output
        sc = TB * TQ * Lk * 4                  # fp32 scores/attn intermediate
        return 2 * (qb + kb + vb + mb + cb + ab) + 2 * sc

    for TQ in _divisors_desc(Lq):
        if TQ > 512:
            continue
        # keep sublane tiling legal for all dtypes unless the block is full-extent
        if TQ != Lq and TQ % 32 != 0:
            continue
        for TB in _divisors_desc(BH):          # largest head batch that fits
            if step_bytes(TB, TQ) <= vmem_budget_bytes:
                return TB, TQ
    return 1, 1  # TODO(synk): key-axis (flash-style) tiling for extreme Lk


@jax.jit
def scaled_dot_product_attention(Q, K, V, attn_mask):
    """
    Q: [B, H, Lq, dk], K: [B, H, Lk, dk], V: [B, H, Lk, dv]
    attn_mask: [B, H, Lq, Lk] (bool / int; nonzero => masked)
    Returns (context [B, H, Lq, dv], attn [B, H, Lq, Lk]).
    """
    B, H, Lq, dk = Q.shape
    Lk = K.shape[2]
    dv = V.shape[3]
    BH = B * H

    q = Q.reshape(BH, Lq, dk)
    k = K.reshape(BH, Lk, dk)
    v = V.reshape(BH, Lk, dv)
    m = attn_mask.reshape(BH, Lq, Lk).astype(jnp.int8)  # 4x less mask HBM traffic vs int32

    in_itemsize = jnp.dtype(Q.dtype).itemsize
    attn_dtype = Q.dtype                                 # torch returns attn in scores' dtype
    attn_itemsize = jnp.dtype(attn_dtype).itemsize
    TB, TQ = _pick_tiles(BH, Lq, Lk, dk, dv, in_itemsize, attn_itemsize)

    grid = (BH // TB, Lq // TQ)
    scale = 1.0 / math.sqrt(dk)

    flops = 2 * BH * Lq * Lk * (dk + dv)
    transcendentals = BH * Lq * Lk
    bytes_accessed = (
        (q.size + k.size + v.size) * in_itemsize
        + m.size                                # int8
        + BH * Lq * dv * in_itemsize            # ctx
        + BH * Lq * Lk * attn_itemsize          # attn
    )

    kernel = functools.partial(_sdpa_kernel, scale=scale)

    ctx, attn = pl.pallas_call(
        kernel,
        out_shape=(
            jax.ShapeDtypeStruct((BH, Lq, dv), Q.dtype),
            jax.ShapeDtypeStruct((BH, Lq, Lk), attn_dtype),
        ),
        grid_spec=pltpu.PrefetchScalarGridSpec(
            num_scalar_prefetch=0,
            grid=grid,
            in_specs=[
                pl.BlockSpec((TB, TQ, dk), lambda i, j: (i, j, 0)),
                pl.BlockSpec((TB, Lk, dk), lambda i, j: (i, 0, 0)),
                pl.BlockSpec((TB, Lk, dv), lambda i, j: (i, 0, 0)),
                pl.BlockSpec((TB, TQ, Lk), lambda i, j: (i, j, 0)),
            ],
            out_specs=[
                pl.BlockSpec((TB, TQ, dv), lambda i, j: (i, j, 0)),
                pl.BlockSpec((TB, TQ, Lk), lambda i, j: (i, j, 0)),
            ],
        ),
        compiler_params=pltpu.CompilerParams(
            # both axes independent -> megacore sharding on v7x (harmless on v5e/v6e)
            dimension_semantics=("parallel", "parallel"),
            vmem_limit_bytes=32 * 1024 * 1024,
        ),
        cost_estimate=pl.CostEstimate(
            flops=flops,
            transcendentals=transcendentals,
            bytes_accessed=bytes_accessed,
        ),
    )(q, k, v, m)

    return ctx.reshape(B, H, Lq, dv), attn.reshape(B, H, Lq, Lk)


def _reference(Q, K, V, attn_mask):
    dk = Q.shape[-1]
    scores = jnp.einsum("bhqd,bhkd->bhqk", Q, K) / jnp.sqrt(jnp.float32(dk))
    scores = jnp.where(attn_mask, -1e9, scores)
    attn = jax.nn.softmax(scores, axis=-1)
    ctx = jnp.einsum("bhqk,bhkd->bhqd", attn, V)
    return ctx, attn


if __name__ == "__main__":
    key = jax.random.PRNGKey(0)
    B, H, Lq, Lk, dk, dv = 2, 4, 8, 8, 32, 32

    kq, kk, kv, km = jax.random.split(key, 4)
    Q = jax.random.normal(kq, (B, H, Lq, dk), dtype=jnp.float32)
    K = jax.random.normal(kk, (B, H, Lk, dk), dtype=jnp.float32)
    V = jax.random.normal(kv, (B, H, Lk, dv), dtype=jnp.float32)
    attn_mask = jax.random.bernoulli(km, p=0.2, shape=(B, H, Lq, Lk))

    ctx, attn = scaled_dot_product_attention(Q, K, V, attn_mask)
    jax.block_until_ready((ctx, attn))

    ref_ctx, ref_attn = _reference(Q, K, V, attn_mask)
    assert jnp.allclose(ctx, ref_ctx, atol=1e-4, rtol=1e-4)
    assert jnp.allclose(attn, ref_attn, atol=1e-5, rtol=1e-5)

    print("KERNEL_OK")
</pallas_src>

<mosaic_0001>
module attributes {stable_mosaic.version = 11 : i64} {
  func.func @_sdpa_kernel(%arg0: i32, %arg1: i32, %arg2: memref<8x8x32xf32, #tpu.memory_space<vmem>>, %arg3: memref<8x8x32xf32, #tpu.memory_space<vmem>>, %arg4: memref<8x8x32xf32, #tpu.memory_space<vmem>>, %arg5: memref<8x8x8xi8, #tpu.memory_space<vmem>>, %arg6: memref<8x8x32xf32, #tpu.memory_space<vmem>>, %arg7: memref<8x8x8xf32, #tpu.memory_space<vmem>>) attributes {dimension_semantics = [#tpu.dimension_semantics<parallel>, #tpu.dimension_semantics<parallel>], iteration_bounds = array<i64: 1, 1>, scalar_prefetch = 0 : i64, scratch_operands = 0 : i64, tpu.core_type = #tpu.core_type<tc>, window_params = [{transform_indices = @transform_0, window_bounds = array<i64: 8, 8, 32>}, {transform_indices = @transform_1, window_bounds = array<i64: 8, 8, 32>}, {transform_indices = @transform_2, window_bounds = array<i64: 8, 8, 32>}, {transform_indices = @transform_3, window_bounds = array<i64: 8, 8, 8>}, {transform_indices = @transform_4, window_bounds = array<i64: 8, 8, 32>}, {transform_indices = @transform_5, window_bounds = array<i64: 8, 8, 8>}]} {
    %c0 = arith.constant 0 : index
    %c0_0 = arith.constant 0 : index
    %c0_1 = arith.constant 0 : index
    %0 = vector.load %arg2[%c0, %c0_0, %c0_1] : memref<8x8x32xf32, #tpu.memory_space<vmem>>, vector<8x8x32xf32>
    %cst = arith.constant 0.176776692 : f32
    %1 = vector.broadcast %cst : f32 to vector<8x8x32xf32>
    %2 = arith.mulf %0, %1 : vector<8x8x32xf32>
    %c0_2 = arith.constant 0 : index
    %c0_3 = arith.constant 0 : index
    %c0_4 = arith.constant 0 : index
    %3 = vector.load %arg3[%c0_2, %c0_3, %c0_4] : memref<8x8x32xf32, #tpu.memory_space<vmem>>, vector<8x8x32xf32>
    %c0_5 = arith.constant 0 : index
    %c0_6 = arith.constant 0 : index
    %c0_7 = arith.constant 0 : index
    %4 = vector.load %arg4[%c0_5, %c0_6, %c0_7] : memref<8x8x32xf32, #tpu.memory_space<vmem>>, vector<8x8x32xf32>
    %c0_8 = arith.constant 0 : index
    %c0_9 = arith.constant 0 : index
    %c0_10 = arith.constant 0 : index
    %5 = vector.load %arg5[%c0_8, %c0_9, %c0_10] : memref<8x8x8xi8, #tpu.memory_space<vmem>>, vector<8x8x8xi8>
    %cst_11 = arith.constant dense<0.000000e+00> : vector<8x8x8xf32>
    %6 = tpu.matmul %2, %3, %cst_11 {dimension_numbers = #tpu.dot_dimension_numbers<[2], [2], [1], [1], [0, 0, 0, 1, 1, 1], [0], [0]>} : vector<8x8x32xf32>, vector<8x8x32xf32>, vector<8x8x8xf32> -> vector<8x8x8xf32>
    %c0_i8 = arith.constant 0 : i8
    %7 = vector.broadcast %c0_i8 : i8 to vector<8x8x8xi8>
    %8 = arith.cmpi ne, %5, %7 : vector<8x8x8xi8>
    %cst_12 = arith.constant -1.000000e+09 : f32
    %9 = vector.broadcast %cst_12 : f32 to vector<8x8x8xf32>
    %10 = arith.select %8, %9, %6 : vector<8x8x8xi1>, vector<8x8x8xf32>
    %cst_13 = arith.constant dense<0xFF800000> : vector<8x8xf32>
    %11 = vector.multi_reduction <maximumf>, %10, %cst_13 [2] : vector<8x8x8xf32> to vector<8x8xf32>
    %12 = vector.shape_cast %11 : vector<8x8xf32> to vector<8x8x1xf32>
    %13 = vector.broadcast %12 : vector<8x8x1xf32> to vector<8x8x8xf32>
    %14 = arith.subf %10, %13 : vector<8x8x8xf32>
    %15 = math.exp %14 : vector<8x8x8xf32>
    %cst_14 = arith.constant dense<0.000000e+00> : vector<8x8xf32>
    %16 = vector.multi_reduction <add>, %15, %cst_14 [2] : vector<8x8x8xf32> to vector<8x8xf32>
    %17 = vector.shape_cast %16 : vector<8x8xf32> to vector<8x8x1xf32>
    %18 = tpu.reciprocal %17 : vector<8x8x1xf32> -> vector<8x8x1xf32>
    %19 = vector.broadcast %18 : vector<8x8x1xf32> to vector<8x8x8xf32>
    %20 = arith.mulf %15, %19 : vector<8x8x8xf32>
    %cst_15 = arith.constant dense<0.000000e+00> : vector<8x8x32xf32>
    %21 = tpu.matmul %20, %4, %cst_15 {dimension_numbers = #tpu.dot_dimension_numbers<[2], [1], [1], [2], [0, 0, 0, 1, 1, 2], [0], [0]>} : vector<8x8x8xf32>, vector<8x8x32xf32>, vector<8x8x32xf32> -> vector<8x8x32xf32>
    %c0_16 = arith.constant 0 : index
    %c0_17 = arith.constant 0 : index
    %c0_18 = arith.constant 0 : index
    %22 = vector.load %arg6[%c0_16, %c0_17, %c0_18] : memref<8x8x32xf32, #tpu.memory_space<vmem>>, vector<8x8x32xf32>
    tpu.vector_store %arg6[%c0_16, %c0_17, %c0_18], %21 {strides = array<i32>} : memref<8x8x32xf32, #tpu.memory_space<vmem>>, vector<8x8x32xf32>,
    %c0_19 = arith.constant 0 : index
    %c0_20 = arith.constant 0 : index
    %c0_21 = arith.constant 0 : index
    %23 = vector.load %arg7[%c0_19, %c0_20, %c0_21] : memref<8x8x8xf32, #tpu.memory_space<vmem>>, vector<8x8x8xf32>
    tpu.vector_store %arg7[%c0_19, %c0_20, %c0_21], %20 {strides = array<i32>} : memref<8x8x8xf32, #tpu.memory_space<vmem>>, vector<8x8x8xf32>,
    return
  }
  func.func @transform_0(%arg0: i32, %arg1: i32) -> (i32, i32, i32) {
    %c0_i32 = arith.constant 0 : i32
    %c0_i32_0 = arith.constant 0 : i32
    return %arg0, %arg1, %c0_i32 : i32, i32, i32
  }
  func.func @transform_1(%arg0: i32, %arg1: i32) -> (i32, i32, i32) {
    %c0_i32 = arith.constant 0 : i32
    %c0_i32_0 = arith.constant 0 : i32
    %c0_i32_1 = arith.constant 0 : i32
    return %arg0, %c0_i32, %c0_i32_0 : i32, i32, i32
  }
  func.func @transform_2(%arg0: i32, %arg1: i32) -> (i32, i32, i32) {
    %c0_i32 = arith.constant 0 : i32
    %c0_i32_0 = arith.constant 0 : i32
    %c0_i32_1 = arith.constant 0 : i32
    return %arg0, %c0_i32, %c0_i32_0 : i32, i32, i32
  }
  func.func @transform_3(%arg0: i32, %arg1: i32) -> (i32, i32, i32) {
    %c0_i32 = arith.constant 0 : i32
    %c0_i32_0 = arith.constant 0 : i32
    return %arg0, %arg1, %c0_i32 : i32, i32, i32
  }
  func.func @transform_4(%arg0: i32, %arg1: i32) -> (i32, i32, i32) {
    %c0_i32 = arith.constant 0 : i32
    %c0_i32_0 = arith.constant 0 : i32
    return %arg0, %arg1, %c0_i32 : i32, i32, i32
  }
  func.func @transform_5(%arg0: i32, %arg1: i32) -> (i32, i32, i32) {
    %c0_i32 = arith.constant 0 : i32
    %c0_i32_0 = arith.constant 0 : i32
    return %arg0, %arg1, %c0_i32 : i32, i32, i32
  }
}

</mosaic_0001>

<bundles_post_ra>
// kernel: scaled_dot_product_attention.1
= control target key start
LH: loop header
LB: loop body
LE: loop exit
PB: predicated region body
PF: predicated region fallthrough
CT: control target
= control target key end

     0   :  { %11 = vsyncpa [#allocation3], 0  ;;  %s1972_s0 = inlined_call_operand.hbm [shape: f32[8,8,32], index: 0, kind: input, shape index: {}]   ;;  %s1973_s1 = inlined_call_operand.hbm [shape: f32[8,8,32], index: 1, kind: input, shape index: {}]   ;;  %s1974_s2 = inlined_call_operand.hbm [shape: f32[8,8,32], index: 2, kind: input, shape index: {}]   ;;  %s1975_s3 = inlined_call_operand.vmem [shape: s8[8,8,8], index: 3, kind: input, shape index: {}]   ;;  %s1976_s4 = inlined_call_operand.hbm [shape: f32[8,8,32], index: 4, kind: output, shape index: {0}]   ;;  %s1977_s5 = inlined_call_operand.hbm [shape: f32[8,8,8], index: 5, kind: output, shape index: {1}]  }
   0x1   :  { %12 = vsyncpa [#allocation6], 0 }
   0x2   :  { %13 = vsyncpa [#allocation4], 0 }
   0x3   :  { %14 = vsyncpa [#allocation10], 0  ;;  %s1762_s18 = smov [#allocation5]   ;;  %s1763_s20 = smov [#allocation2]  }
   0x4   :  { %s32_s19 = sshll.u32 %s1762_s18, 4  ;;  %s20_s21 = sshll.u32 %s1763_s20, 4  ;;  %s33_s19 = int_to_ptr.vmem [resolvable:$true] %s32_s19  ;;  %s21_s21 = int_to_ptr.vmem [resolvable:$true] %s20_s21 }
   0x5   :  { %s1662_s22 = scalar_lea.vmem %s33_s19, 1024  ;;  %p1667_p1 = scmp.lt.s32.totalorder %s33_s19, %s33_s19 }
   0x6   :  { %p1663_p0 = scmp.ne.s32.totalorder %s33_s19, %s1662_s22  ;;  %p1668_p2 = scmp.lt.s32.totalorder %s1662_s22, %s1662_s22 }
   0x8   :  { %p1669_p3 = por %p1668_p2, %p1667_p1 }
   0xa   :  { %p1670_p4 = pnand %p1669_p3, %p1663_p0 }
   0xc   :  { %1673 = shalt.err (!%p1670_p4)
}
   0xd   :  { %s1764_s23 = smov 128   ;;  %s1765_s24 = smov 8  }
   0xe   :  { %38 = dma.hbm_to_vmem [thread:$0]  %s1973_s1, 1024, %s33_s19, [#allocation6], %s1764_s23, %s1764_s23, %s1765_s24  }
   0xf   :  { %s1682_s27 = scalar_lea.vmem %s21_s21, 1024  ;;  %p1687_p6 = scmp.lt.s32.totalorder %s21_s21, %s21_s21 }
  0x10   :  { %p1683_p5 = scmp.ne.s32.totalorder %s21_s21, %s1682_s27  ;;  %p1688_p7 = scmp.lt.s32.totalorder %s1682_s27, %s1682_s27 }
  0x12   :  { %p1689_p8 = por %p1688_p7, %p1687_p6 }
  0x14   :  { %p1690_p9 = pnand %p1689_p8, %p1683_p5 }
  0x16   :  { %1693 = shalt.err (!%p1690_p9)
}
  0x17   :  { %26 = dma.hbm_to_vmem [thread:$0]  %s1972_s0, 1024, %s21_s21, [#allocation3], %s1764_s23, %s1764_s23, %s1765_s24  }
  0x18   :  { %s1766_s30 = smov [#allocation7]  }
  0x19   :  { %s44_s6 = sshll.u32 %s1766_s30, 4  ;;  %s45_s6 = int_to_ptr.vmem [resolvable:$true] %s44_s6 }
  0x1a   :  { %s1702_s7 = scalar_lea.vmem %s45_s6, 1024  ;;  %p1707_p11 = scmp.lt.s32.totalorder %s45_s6, %s45_s6 }
  0x1b   :  { %p1703_p10 = scmp.ne.s32.totalorder %s45_s6, %s1702_s7  ;;  %p1708_p12 = scmp.lt.s32.totalorder %s1702_s7, %s1702_s7 }
  0x1d   :  { %p1709_p13 = por %p1708_p12, %p1707_p11 }
  0x1f   :  { %p1710_p0 = pnand %p1709_p13, %p1703_p10 }
  0x21   :  { %1713 = shalt.err (!%p1710_p0)
}
  0x22   :  { %50 = dma.hbm_to_vmem [thread:$0]  %s1974_s2, 1024, %s45_s6, [#allocation6], %s1764_s23, %s1764_s23, %s1765_s24  }
  0x23   :  { %1754 = dma.done.wait [#allocation3], 1024  }
  0x24   :  { %1755 = vsyncadd [#allocation3], 4294966272 }
  0x25   :  { %1756 = dma.done.wait [#allocation6], 2048  }
  0x26   :  { %1757 = vsyncadd [#allocation6], 4294965248  ;;  %v1767_v0 = vmov 0.0   ;;  %vm1768_vm0 = vmmov 0   ;;  %vm104_vm1 = vcmask 261120   ;;  %v80_v1 = vld [vmem:[#allocation5] sm:$0xff] }
  0x27   :  { %1532 = vmatprep.subr.mxu0 %v1767_v0  ;;  %1534 = vmatprep.mubr.msk.f32.mxu0 %vm1768_vm0, %v1767_v0  ;;  %v64_v2 = vld [vmem:[#allocation2] sm:$0xff]  ;;  %v81_v3 = vld [vmem:[#allocation5 + $0x8] sm:$0xff]  ;;  %v66_v6 = vld [vmem:[#allocation2 + $0x10] sm:$0xff]  ;;  %v1769_v29 = vmov 0   ;;  %vm753_vm10 = vcmask 64512  }
  0x28   :  { %1537 = vmatprep.subr.mxu1 %v1767_v0  ;;  %1539 = vmatprep.mubr.msk.f32.mxu1 %vm1768_vm0, %v1767_v0  ;;  %v72_v4 = vmul.f32 0.17677669, %v64_v2  ;;  %v65_v5 = vld [vmem:[#allocation2 + $0x8] sm:$0xff]  ;;  %v82_v7 = vld [vmem:[#allocation5 + $0x10] sm:$0xff]  ;;  %v83_v9 = vld [vmem:[#allocation5 + $0x18] sm:$0xff] }
  0x29   :  { %1533 = vmatpush3.xpose.msk.msra.mxu0 %vm104_vm1, %v80_v1  ;;  %1538 = vmatpush3.xpose.msk.msra.mxu1 %vm104_vm1, %v81_v3  ;;  %v73_v8 = vmul.f32 0.17677669, %v65_v5  ;;  %v67_v10 = vld [vmem:[#allocation2 + $0x18] sm:$0xff]  ;;  %v74_v11 = vmul.f32 0.17677669, %v66_v6  ;;  %v68_v13 = vld [vmem:[#allocation2 + $0x20] sm:$0xff] }
  0x2a   :  { %1542 = vmatprep.subr.mxu0 %v1767_v0  ;;  %1547 = vmatprep.subr.mxu1 %v1767_v0  ;;  %v75_v12 = vmul.f32 0.17677669, %v67_v10  ;;  %v84_v14 = vld [vmem:[#allocation5 + $0x20] sm:$0xff]  ;;  %v69_v15 = vld [vmem:[#allocation2 + $0x28] sm:$0xff]  ;;  %v76_v17 = vmul.f32 0.17677669, %v68_v13 }
  0x2b   :  { %v85_v16 = vld [vmem:[#allocation5 + $0x28] sm:$0xff]  ;;  %v77_v18 = vmul.f32 0.17677669, %v69_v15  ;;  %v70_v19 = vld [vmem:[#allocation2 + $0x30] sm:$0xff]  ;;  %v71_v21 = vld [vmem:[#allocation2 + $0x38] sm:$0xff] }
  0x2c   :  { %1535 = vmatmul.mubr.msk.f32.vlgmr.msra.gmra.mxu0 %vm104_vm1, %v72_v4  ;;  %1540 = vmatmul.mubr.msk.f32.vlgmr.msra.gmra.mxu1 %vm104_vm1, %v73_v8  ;;  %v86_v20 = vld [vmem:[#allocation5 + $0x30] sm:$0xff]  ;;  %v87_v22 = vld [vmem:[#allocation5 + $0x38] sm:$0xff]  ;;  %v78_v23 = vmul.f32 0.17677669, %v70_v19  ;;  %v79_v24 = vmul.f32 0.17677669, %v71_v21 }
  0x2d   :  { %1543 = vmatpush3.xpose.msk.msra.mxu0 %vm104_vm1, %v82_v7  ;;  %1544 = vmatprep.mubr.msk.f32.mxu0 %vm1768_vm0, %v1767_v0  ;;  %v96_v25 = vld [vmem:[%s1975_s3] sm:$0x3]  ;;  %v97_v26 = vld [vmem:[%s1975_s3 + $0x2] sm:$0x3]  ;;  %v98_v27 = vld [vmem:[%s1975_s3 + $0x4] sm:$0x3] }
  0x2e   :  { %1548 = vmatpush3.xpose.msk.msra.mxu1 %vm104_vm1, %v83_v9  ;;  %1552 = vmatprep.subr.mxu0 %v1767_v0  ;;  %vm713_vm2 = vnez %v96_v25  ;;  %vm714_vm3 = vnez %v97_v26  ;;  %v99_v28 = vld [vmem:[%s1975_s3 + $0x6] sm:$0x3]  ;;  %vm715_vm4 = vnez %v98_v27  ;;  %v100_v32 = vld [vmem:[%s1975_s3 + $0x8] sm:$0x3]  ;;  %v101_v35 = vld [vmem:[%s1975_s3 + $0xa] sm:$0x3] }
  0x2f   :  { %1549 = vmatprep.mubr.msk.f32.mxu1 %vm1768_vm0, %v1767_v0  ;;  %1557 = vmatprep.subr.mxu1 %v1767_v0  ;;  %v721_v30 = vsel %vm713_vm2, 16843009, %v1769_v29  ;;  %v722_v31 = vsel %vm714_vm3, 16843009, %v1769_v29  ;;  %vm716_vm5 = vnez %v99_v28  ;;  %v723_v36 = vsel %vm715_vm4, 16843009, %v1769_v29 }
  0x30   :  { %1545 = vmatmul.mubr.msk.f32.vlgmr.msra.gmra.mxu0 %vm104_vm1, %v74_v11  ;;  %v729_v33 = vunpack.c.0.s8 %v721_v30  ;;  %v730_v34 = vunpack.c.0.s8 %v722_v31  ;;  %v724_v37 = vsel %vm716_vm5, 16843009, %v1769_v29  ;;  %vm717_vm6 = vnez %v100_v32  ;;  %v102_v38 = vld [vmem:[%s1975_s3 + $0xc] sm:$0x3]  ;;  %v103_v40 = vld [vmem:[%s1975_s3 + $0xe] sm:$0x3] }
  0x31   :  { %1553 = vmatpush3.xpose.msk.msra.mxu0 %vm104_vm1, %v84_v14  ;;  %1550 = vmatmul.mubr.msk.f32.vlgmr.msra.gmra.mxu1 %vm104_vm1, %v75_v12  ;;  %vm718_vm7 = vnez %v101_v35  ;;  %v731_v39 = vunpack.c.0.s8 %v723_v36  ;;  %v732_v41 = vunpack.c.0.s8 %v724_v37  ;;  %v725_v42 = vsel %vm717_vm6, 16843009, %v1769_v29  ;;  %s1770_s3 = smov [#allocation9]  }
  0x32   :  { %1554 = vmatprep.mubr.msk.f32.mxu0 %vm1768_vm0, %v1767_v0  ;;  %1558 = vmatpush3.xpose.msk.msra.mxu1 %vm104_vm1, %v85_v16  ;;  %vm737_vm8 = vcmp.ne.s32.totalorder %v729_v33, 0  ;;  %vm738_vm9 = vcmp.ne.s32.totalorder %v730_v34, 0  ;;  %v726_v45 = vsel %vm718_vm7, 16843009, %v1769_v29  ;;  %vm719_vm11 = vnez %v102_v38  ;;  %s1459_s25 = sshll.u32 %s1770_s3, 4  ;;  %s1460_s25 = int_to_ptr.vmem [resolvable:$true] %s1459_s25 }
  0x33   :  { %1562 = vmatprep.subr.mxu0 %v1767_v0  ;;  %1559 = vmatprep.mubr.msk.f32.mxu1 %vm1768_vm0, %v1767_v0  ;;  %vm720_vm12 = vnez %v103_v40  ;;  %vm739_vm13 = vcmp.ne.s32.totalorder %v731_v39, 0  ;;  %v733_v51 = vunpack.c.0.s8 %v725_v42  ;;  %vm740_vm14 = vcmp.ne.s32.totalorder %v732_v41, 0  ;;  %s1714_s26 = scalar_lea.vmem %s1460_s25, 1024  ;;  %p1719_p2 = scmp.lt.s32.totalorder %s1460_s25, %s1460_s25 }
  0x34   :  { %1555 = vmatmul.mubr.msk.f32.vlgmr.msra.gmra.mxu0 %vm104_vm1, %v76_v17  ;;  %1567 = vmatprep.subr.mxu1 %v1767_v0  ;;  %v734_v52 = vunpack.c.0.s8 %v726_v45  ;;  %v727_v53 = vsel %vm719_vm11, 16843009, %v1769_v29  ;;  %v728_v56 = vsel %vm720_vm12, 16843009, %v1769_v29  ;;  %p1715_p1 = scmp.ne.s32.totalorder %s1460_s25, %s1714_s26  ;;  %p1720_p3 = scmp.lt.s32.totalorder %s1714_s26, %s1714_s26 }
  0x35   :  { %1563 = vmatpush3.xpose.msk.msra.mxu0 %vm104_vm1, %v86_v20  ;;  %1560 = vmatmul.mubr.msk.f32.vlgmr.msra.gmra.mxu1 %vm104_vm1, %v77_v18  ;;  %vm741_vm15 = vcmp.ne.s32.totalorder %v733_v51, 0  ;;  %v735_v62 = vunpack.c.0.s8 %v727_v53  ;;  %v736_v1 = vunpack.c.0.s8 %v728_v56 }
  0x36   :  { %1564 = vmatprep.mubr.msk.f32.mxu0 %vm1768_vm0, %v1767_v0  ;;  %1568 = vmatpush3.xpose.msk.msra.mxu1 %vm104_vm1, %v87_v22  ;;  %vm742_vm2 = vcmp.ne.s32.totalorder %v734_v52, 0  ;;  %p1721_p4 = por %p1720_p3, %p1719_p2 }
  0x37   :  { %1569 = vmatprep.mubr.msk.f32.mxu1 %vm1768_vm0, %v1767_v0  ;;  %1572 = vmatprep.subr.mxu0 %v1767_v0  ;;  %vm743_vm3 = vcmp.ne.s32.totalorder %v735_v62, 0  ;;  %vm744_vm4 = vcmp.ne.s32.totalorder %v736_v1, 0 }
  0x38   :  { %1565 = vmatmul.mubr.msk.f32.vlgmr.msra.gmra.mxu0 %vm104_vm1, %v78_v23  ;;  %1577 = vmatprep.subr.mxu1 %v1767_v0  ;;  %p1722_p5 = pnand %p1721_p4, %p1715_p1 }
  0x39   :  { %1570 = vmatmul.mubr.msk.f32.vlgmr.msra.gmra.mxu1 %vm104_vm1, %v79_v24  ;;  %1574 = vmatprep.mubr.msk.f32.mxu0 %vm1768_vm0, %v1767_v0 }
  0x3a   :  { %1579 = vmatprep.mubr.msk.f32.mxu1 %vm1768_vm0, %v1767_v0 }
  0xec   :  { %v177_v43 = vpop.f32.mrf.mxu0  ;;  %v253_v44 = vpop.f32.mrf.mxu1 }
  0xed   :  { %v745_v46 = vsel %vm737_vm8, -1e+09, %v177_v43  ;;  %v746_v47 = vsel %vm738_vm9, -1e+09, %v253_v44 }
  0xee   :  { %v1536_v48 = vpop.f32.mrf.mxu0  ;;  %v754_v49 = vsel %vm753_vm10, %v745_v46, -inf  ;;  %v1541_v50 = vpop.f32.mrf.mxu1  ;;  %v757_v55 = vsel %vm753_vm10, %v746_v47, -inf }
  0xef   :  { %755 = vmax.xlane.f32.xlu0 %v754_v49 }
  0xf0   :  { %v329_v54 = vpop.f32.mrf.mxu0 }
  0xf1   :  { %v747_v57 = vsel %vm739_vm13, -1e+09, %v329_v54  ;;  %v405_v58 = vpop.f32.mrf.mxu1 }
  0xf2   :  { %v1546_v59 = vpop.f32.mrf.mxu0  ;;  %v748_v60 = vsel %vm740_vm14, -1e+09, %v405_v58  ;;  %v760_v61 = vsel %vm753_vm10, %v747_v57, -inf }
  0xf3   :  { %758 = vmax.xlane.f32.xlu0 %v757_v55  ;;  %761 = vmax.xlane.f32.xlu1 %v760_v61  ;;  %v1551_v63 = vpop.f32.mrf.mxu1  ;;  %v763_v3 = vsel %vm753_vm10, %v748_v60, -inf  ;;  %v88_v59 = vld [vmem:[#allocation7] sm:$0xff] }
  0xf4   :  { %v481_v2 = vpop.f32.mrf.mxu0  ;;  %1573 = vmatpush3.msra.mxu0 %v88_v59 }
  0xf5   :  { %v749_v4 = vsel %vm741_vm15, -1e+09, %v481_v2  ;;  %v557_v5 = vpop.f32.mrf.mxu1  ;;  %1582 = vmatprep.subr.mxu0 %v1767_v0 }
  0xf6   :  { %v1556_v6 = vpop.f32.mrf.mxu0  ;;  %v750_v7 = vsel %vm742_vm2, -1e+09, %v557_v5  ;;  %v766_v8 = vsel %vm753_vm10, %v749_v4, -inf }
  0xf7   :  { %764 = vmax.xlane.f32.xlu1 %v763_v3  ;;  %767 = vmax.xlane.f32.xlu0 %v766_v8  ;;  %v1561_v9 = vpop.f32.mrf.mxu1  ;;  %v769_v11 = vsel %vm753_vm10, %v750_v7, -inf }
  0xf8   :  { %v633_v10 = vpop.f32.mrf.mxu0 }
  0xf9   :  { %v751_v12 = vsel %vm743_vm3, -1e+09, %v633_v10  ;;  %v709_v13 = vpop.f32.mrf.mxu1 }
  0xfa   :  { %v752_v14 = vsel %vm744_vm4, -1e+09, %v709_v13  ;;  %v772_v15 = vsel %vm753_vm10, %v751_v12, -inf  ;;  %v1566_v16 = vpop.f32.mrf.mxu0 }
  0xfb   :  { %770 = vmax.xlane.f32.xlu1 %v769_v11  ;;  %773 = vmax.xlane.f32.xlu0 %v772_v15  ;;  %v1571_v17 = vpop.f32.mrf.mxu1  ;;  %v775_v18 = vsel %vm753_vm10, %v752_v14, -inf }
  0xff   :  { %776 = vmax.xlane.f32.xlu1 %v775_v18  ;;  %v93_v18 = vld [vmem:[#allocation7 + $0x28] sm:$0xff] }
 0x178   :  { %v756_v19 = vpop.xlane.xlu0 %755 }
 0x179   :  { %v778_v20 = vsub.f32 %v745_v46, %v756_v19 }
 0x17b   :  { %v786_v21 = vmul.f32 1.442695, %v778_v20  ;;  %v94_v20 = vld [vmem:[#allocation7 + $0x30] sm:$0xff] }
 0x17c   :  { %v759_v22 = vpop.xlane.xlu0 %758  ;;  %v762_v23 = vpop.xlane.xlu1 %761 }
 0x17d   :  { %1622 = vpow2.f32 %v786_v21  ;;  %v779_v24 = vsub.f32 %v746_v47, %v759_v22  ;;  %v780_v25 = vsub.f32 %v747_v57, %v762_v23 }
 0x17f   :  { %v788_v26 = vmul.f32 1.442695, %v779_v24  ;;  %v790_v27 = vmul.f32 1.442695, %v780_v25  ;;  %v95_v24 = vld [vmem:[#allocation7 + $0x38] sm:$0xff] }
 0x180   :  { %v765_v28 = vpop.xlane.xlu1 %764  ;;  %v768_v29 = vpop.xlane.xlu0 %767 }
 0x181   :  { %1624 = vpow2.f32 %v788_v26  ;;  %v781_v30 = vsub.f32 %v748_v60, %v765_v28  ;;  %v782_v31 = vsub.f32 %v749_v4, %v768_v29  ;;  %v89_v60 = vld [vmem:[#allocation7 + $0x8] sm:$0xff] }
 0x182   :  { %1626 = vpow2.f32 %v790_v27  ;;  %1578 = vmatpush3.msra.mxu1 %v89_v60 }
 0x183   :  { %v792_v32 = vmul.f32 1.442695, %v781_v30  ;;  %v794_v33 = vmul.f32 1.442695, %v782_v31  ;;  %1587 = vmatprep.subr.mxu1 %v1767_v0 }
 0x184   :  { %v771_v34 = vpop.xlane.xlu1 %770  ;;  %v774_v35 = vpop.xlane.xlu0 %773 }
 0x185   :  { %1628 = vpow2.f32 %v792_v32  ;;  %v783_v36 = vsub.f32 %v750_v7, %v771_v34  ;;  %v784_v37 = vsub.f32 %v751_v12, %v774_v35  ;;  %v90_v7 = vld [vmem:[#allocation7 + $0x10] sm:$0xff]  ;;  %v91_v12 = vld [vmem:[#allocation7 + $0x18] sm:$0xff] }
 0x186   :  { %1630 = vpow2.f32 %v794_v33 }
 0x187   :  { %v796_v38 = vmul.f32 1.442695, %v783_v36  ;;  %v798_v39 = vmul.f32 1.442695, %v784_v37 }
 0x188   :  { %v777_v40 = vpop.xlane.xlu1 %776 }
 0x189   :  { %1632 = vpow2.f32 %v796_v38  ;;  %v785_v41 = vsub.f32 %v752_v14, %v777_v40  ;;  %v92_v14 = vld [vmem:[#allocation7 + $0x20] sm:$0xff] }
 0x18a   :  { %v1623_v42 = vpop.eup %1622  ;;  %1634 = vpow2.f32 %v798_v39 }
 0x18b   :  { %v800_v43 = vmul.f32 1.442695, %v785_v41  ;;  %v802_v44 = vsel %vm753_vm10, %v1623_v42, 0.0 }
 0x18c   :  { %803 = vadd.xlane.f32.xlu0 %v802_v44 }
 0x18d   :  { %1636 = vpow2.f32 %v800_v43 }
 0x18e   :  { %v1625_v45 = vpop.eup %1624 }
 0x18f   :  { %v1627_v46 = vpop.eup %1626  ;;  %v805_v47 = vsel %vm753_vm10, %v1625_v45, 0.0 }
 0x190   :  { %806 = vadd.xlane.f32.xlu1 %v805_v47  ;;  %v808_v48 = vsel %vm753_vm10, %v1627_v46, 0.0 }
 0x191   :  { %809 = vadd.xlane.f32.xlu0 %v808_v48 }
 0x192   :  { %v1629_v49 = vpop.eup %1628 }
 0x193   :  { %v1631_v50 = vpop.eup %1630  ;;  %v811_v51 = vsel %vm753_vm10, %v1629_v49, 0.0 }
 0x194   :  { %812 = vadd.xlane.f32.xlu1 %v811_v51  ;;  %v814_v52 = vsel %vm753_vm10, %v1631_v50, 0.0 }
 0x195   :  { %815 = vadd.xlane.f32.xlu0 %v814_v52 }
 0x196   :  { %v1903_v53 = vpop.eup %1632 }
 0x197   :  { %v1905_v54 = vpop.eup %1634  ;;  %v817_v55 = vsel %vm753_vm10, %v1903_v53, 0.0 }
 0x198   :  { %818 = vadd.xlane.f32.xlu1 %v817_v55  ;;  %v820_v56 = vsel %vm753_vm10, %v1905_v54, 0.0 }
 0x199   :  { %821 = vadd.xlane.f32.xlu0 %v820_v56 }
 0x19a   :  { %v1911_v57 = vpop.eup %1636 }
 0x19b   :  { %v823_v58 = vsel %vm753_vm10, %v1911_v57, 0.0 }
 0x19c   :  { %824 = vadd.xlane.f32.xlu1 %v823_v58 }
 0x215   :  { %v804_v61 = vpop.xlane.xlu0 %803 }
 0x216   :  { %1638 = vrcp.f32 %v804_v61 }
 0x219   :  { %v807_v62 = vpop.xlane.xlu1 %806 }
 0x21a   :  { %1640 = vrcp.f32 %v807_v62  ;;  %v810_v63 = vpop.xlane.xlu0 %809 }
 0x21b   :  { %1642 = vrcp.f32 %v810_v63 }
 0x21d   :  { %v813_v1 = vpop.xlane.xlu1 %812 }
 0x21e   :  { %1644 = vrcp.f32 %v813_v1  ;;  %v816_v2 = vpop.xlane.xlu0 %815 }
 0x21f   :  { %1646 = vrcp.f32 %v816_v2 }
 0x221   :  { %v819_v3 = vpop.xlane.xlu1 %818 }
 0x222   :  { %1648 = vrcp.f32 %v819_v3  ;;  %v822_v4 = vpop.xlane.xlu0 %821 }
 0x223   :  { %v1639_v5 = vpop.eup %1638  ;;  %1650 = vrcp.f32 %v822_v4 }
 0x224   :  { %v834_v6 = vmul.f32 %v1639_v5, %v1623_v42 }
 0x225   :  { %v825_v8 = vpop.xlane.xlu1 %824 }
 0x226   :  { %1652 = vrcp.f32 %v825_v8  ;;  %1575 = vmatmul.mubr.msk.f32.vlgmr.msra.gmra.mxu0 %vm753_vm10, %v834_v6  ;;  %1434 = vst.msk [vmem:[#allocation9] sm:$0xff] %vm753_vm10, %v834_v6 }
 0x227   :  { %v1641_v9 = vpop.eup %1640  ;;  %1583 = vmatpush3.msra.mxu0 %v90_v7  ;;  %1584 = vmatprep.mubr.msk.f32.mxu0 %vm1768_vm0, %v1767_v0 }
 0x228   :  { %v1643_v10 = vpop.eup %1642  ;;  %v835_v11 = vmul.f32 %v1641_v9, %v1625_v45  ;;  %1592 = vmatprep.subr.mxu0 %v1767_v0 }
 0x229   :  { %v836_v13 = vmul.f32 %v1643_v10, %v1627_v46 }
 0x22a   :  { %1580 = vmatmul.mubr.msk.f32.vlgmr.msra.gmra.mxu1 %vm753_vm10, %v835_v11  ;;  %1435 = vst.msk [vmem:[#allocation9 + $0x8] sm:$0xff] %vm753_vm10, %v835_v11 }
 0x22b   :  { %v1645_v15 = vpop.eup %1644  ;;  %1585 = vmatmul.mubr.msk.f32.vlgmr.msra.gmra.mxu0 %vm753_vm10, %v836_v13  ;;  %1436 = vst.msk [vmem:[#allocation9 + $0x10] sm:$0xff] %vm753_vm10, %v836_v13  ;;  %1588 = vmatpush3.msra.mxu1 %v91_v12 }
 0x22c   :  { %v1647_v16 = vpop.eup %1646  ;;  %1589 = vmatprep.mubr.msk.f32.mxu1 %vm1768_vm0, %v1767_v0  ;;  %1593 = vmatpush3.msra.mxu0 %v92_v14  ;;  %v837_v17 = vmul.f32 %v1645_v15, %v1629_v49 }
 0x22d   :  { %1594 = vmatprep.mubr.msk.f32.mxu0 %vm1768_vm0, %v1767_v0  ;;  %v838_v19 = vmul.f32 %v1647_v16, %v1631_v50  ;;  %1597 = vmatprep.subr.mxu1 %v1767_v0 }
 0x22e   :  { %1590 = vmatmul.mubr.msk.f32.vlgmr.msra.gmra.mxu1 %vm753_vm10, %v837_v17  ;;  %1437 = vst.msk [vmem:[#allocation9 + $0x18] sm:$0xff] %vm753_vm10, %v837_v17  ;;  %1602 = vmatprep.subr.mxu0 %v1767_v0 }
 0x22f   :  { %v1649_v21 = vpop.eup %1648  ;;  %1595 = vmatmul.mubr.msk.f32.vlgmr.msra.gmra.mxu0 %vm753_vm10, %v838_v19  ;;  %1438 = vst.msk [vmem:[#allocation9 + $0x20] sm:$0xff] %vm753_vm10, %v838_v19  ;;  %1598 = vmatpush3.msra.mxu1 %v93_v18 }
 0x230   :  { %v1651_v22 = vpop.eup %1650  ;;  %1599 = vmatprep.mubr.msk.f32.mxu1 %vm1768_vm0, %v1767_v0  ;;  %1603 = vmatpush3.msra.mxu0 %v94_v20  ;;  %v839_v23 = vmul.f32 %v1649_v21, %v1903_v53 }
 0x231   :  { %1604 = vmatprep.mubr.msk.f32.mxu0 %vm1768_vm0, %v1767_v0  ;;  %v840_v25 = vmul.f32 %v1651_v22, %v1905_v54  ;;  %1607 = vmatprep.subr.mxu1 %v1767_v0 }
 0x232   :  { %1600 = vmatmul.mubr.msk.f32.vlgmr.msra.gmra.mxu1 %vm753_vm10, %v839_v23  ;;  %1439 = vst.msk [vmem:[#allocation9 + $0x28] sm:$0xff] %vm753_vm10, %v839_v23 }
 0x233   :  { %v1653_v26 = vpop.eup %1652  ;;  %1605 = vmatmul.mubr.msk.f32.vlgmr.msra.gmra.mxu0 %vm753_vm10, %v840_v25  ;;  %1440 = vst.msk [vmem:[#allocation9 + $0x30] sm:$0xff] %vm753_vm10, %v840_v25  ;;  %1608 = vmatpush3.msra.mxu1 %v95_v24 }
 0x234   :  { %1609 = vmatprep.mubr.msk.f32.mxu1 %vm1768_vm0, %v1767_v0  ;;  %v841_v27 = vmul.f32 %v1653_v26, %v1911_v57 }
 0x236   :  { %1610 = vmatmul.mubr.msk.f32.vlgmr.msra.gmra.mxu1 %vm753_vm10, %v841_v27  ;;  %1441 = vst.msk [vmem:[#allocation9 + $0x38] sm:$0xff] %vm753_vm10, %v841_v27 }
 0x237   :  { %1725 = shalt.err (!%p1722_p5)
}
 0x238   :  { %1465 = dma.vmem_to_hbm [thread:$0]  %s1460_s25, 1024, %s1977_s5, [#allocation10], %s1764_s23, %s1764_s23, %s1765_s24  }
 0x239   :  { %s1771_s5 = smov [#allocation8]  }
 0x23a   :  { %s1447_s29 = sshll.u32 %s1771_s5, 4  ;;  %s1448_s29 = int_to_ptr.vmem [resolvable:$true] %s1447_s29 }
 0x23b   :  { %s1734_s30 = scalar_lea.vmem %s1448_s29, 1024  ;;  %p1739_p7 = scmp.lt.s32.totalorder %s1448_s29, %s1448_s29 }
 0x23c   :  { %p1735_p6 = scmp.ne.s32.totalorder %s1448_s29, %s1734_s30  ;;  %p1740_p8 = scmp.lt.s32.totalorder %s1734_s30, %s1734_s30 }
 0x23e   :  { %p1741_p9 = por %p1740_p8, %p1739_p7 }
 0x240   :  { %p1742_p10 = pnand %p1741_p9, %p1735_p6 }
 0x2e6   :  { %v911_v0 = vpop.f32.mrf.mxu0 }
 0x2e7   :  { %1426 = vst.msk [vmem:[#allocation8] sm:$0xff] %vm104_vm1, %v911_v0 }
 0x2e8   :  { %v1576_v28 = vpop.f32.mrf.mxu0 }
 0x2ea   :  { %v984_v29 = vpop.f32.mrf.mxu1 }
 0x2eb   :  { %1427 = vst.msk [vmem:[#allocation8 + $0x8] sm:$0xff] %vm104_vm1, %v984_v29  ;;  %v1057_v30 = vpop.f32.mrf.mxu0 }
 0x2ec   :  { %1428 = vst.msk [vmem:[#allocation8 + $0x10] sm:$0xff] %vm104_vm1, %v1057_v30  ;;  %v1581_v31 = vpop.f32.mrf.mxu1 }
 0x2ed   :  { %v1586_v32 = vpop.f32.mrf.mxu0 }
 0x2ee   :  { %v1130_v33 = vpop.f32.mrf.mxu1 }
 0x2ef   :  { %1429 = vst.msk [vmem:[#allocation8 + $0x18] sm:$0xff] %vm104_vm1, %v1130_v33  ;;  %v1203_v34 = vpop.f32.mrf.mxu0 }
 0x2f0   :  { %1430 = vst.msk [vmem:[#allocation8 + $0x20] sm:$0xff] %vm104_vm1, %v1203_v34  ;;  %v1591_v35 = vpop.f32.mrf.mxu1 }
 0x2f1   :  { %v1596_v36 = vpop.f32.mrf.mxu0 }
 0x2f2   :  { %v1276_v37 = vpop.f32.mrf.mxu1 }
 0x2f3   :  { %1431 = vst.msk [vmem:[#allocation8 + $0x28] sm:$0xff] %vm104_vm1, %v1276_v37  ;;  %v1349_v38 = vpop.f32.mrf.mxu0 }
 0x2f4   :  { %1432 = vst.msk [vmem:[#allocation8 + $0x30] sm:$0xff] %vm104_vm1, %v1349_v38  ;;  %v1601_v39 = vpop.f32.mrf.mxu1 }
 0x2f5   :  { %v1606_v40 = vpop.f32.mrf.mxu0 }
 0x2f6   :  { %v1422_v41 = vpop.f32.mrf.mxu1 }
 0x2f7   :  { %1433 = vst.msk [vmem:[#allocation8 + $0x38] sm:$0xff] %vm104_vm1, %v1422_v41 }
 0x2f8   :  { %v1611_v42 = vpop.f32.mrf.mxu1 }
 0x2f9   :  { %1745 = shalt.err (!%p1742_p10)
}
 0x2fa   :  { %1453 = dma.vmem_to_hbm [thread:$0]  %s1448_s29, 1024, %s1976_s4, [#allocation4], %s1764_s23, %s1764_s23, %s1765_s24  }
 0x2fb   :  { %1758 = dma.done.wait [#allocation4], 1024  }
 0x2fc   :  { %1759 = vsyncadd [#allocation4], 4294966272 }
 0x2fd   :  { %1760 = dma.done.wait [#allocation10], 1024  }
 0x2fe   :  { %1761 = vsyncadd [#allocation10], 4294966272 }
 0x2ff   :  { %1472 = vsyncpa [#allocation3], 1 }
 0x300   :  { %1473 = vsyncpa [#allocation6], 1 }
 0x301   :  { %1474 = vsyncpa [#allocation4], 1 }
 0x302   :  { %1475 = vsyncpa [#allocation10], 1 }

</bundles_post_ra>
